<compile_context>
chip_gen: v5e
topology: v5e:2x2
jax: 0.10.0
libtpu: 0.0.40
codegen_flags: <defaults>
</compile_context>

<pallas_src>
import functools

import jax
import jax.numpy as jnp
import numpy as np
from jax.experimental import pallas as pl
from jax.experimental.pallas import tpu as pltpu


# ----------------------------- Pallas kernel -------------------------------

def _proj_fused_kernel(x_ref, w_ref, b_ref, pos_ref, o_ref):
    # x: (1, tm, K) bf16, w: (K, Ep) bf16, b: (1, Ep) f32, pos: (tm, Ep) f32
    # o: (1, tm, Ep) f32 = x @ w + b + pos   (f32 MXU accumulation)
    x = x_ref[...][0]                                        # (tm, K)
    acc = jnp.dot(x, w_ref[...], preferred_element_type=jnp.float32)
    out = acc + b_ref[...] + pos_ref[...]                    # fused epilogue
    o_ref[...] = out[None].astype(o_ref.dtype)               # lane-dense store


# ------------------------------- helpers ------------------------------------

def _round_up(x, m):
    return (x + m - 1) // m * m


def _pick_tm(n_patches, target_rows=512):
    """Largest row tile dividing n_patches that obeys the sublane rule
    (multiple of 8); falls back to the full n_patches axis (full-dim
    exception). Decoupled from Hp*Wp geometry."""
    cands = [d for d in range(8, min(n_patches, target_rows) + 1, 8)
             if n_patches % d == 0]
    return max(cands) if cands else n_patches


def fused_patch_proj(patches, w, bias, pos, *, tm):
    """patches (B, P, K) bf16 @ w (K, Ep) bf16 + bias (1, Ep) + pos (P, Ep)
    -> (B, P, Ep) f32, tiled over (batch, patch-row blocks)."""
    B, P, K = patches.shape
    Ep = w.shape[1]
    nb = P // tm

    flops = 2 * B * P * K * Ep
    bytes_accessed = (patches.size * 2 + w.size * 2 + bias.size * 4
                      + pos.size * 4 + B * P * Ep * 4)

    return pl.pallas_call(
        _proj_fused_kernel,
        out_shape=jax.ShapeDtypeStruct((B, P, Ep), jnp.float32),
        grid_spec=pltpu.PrefetchScalarGridSpec(
            num_scalar_prefetch=0,
            grid=(B, nb),
            in_specs=[
                pl.BlockSpec((1, tm, K), lambda b, m: (b, m, 0)),
                pl.BlockSpec((K, Ep), lambda b, m: (0, 0)),   # grid-invariant W
                pl.BlockSpec((1, Ep), lambda b, m: (0, 0)),   # grid-invariant bias
                pl.BlockSpec((tm, Ep), lambda b, m: (m, 0)),  # pos rows for this tile
            ],
            out_specs=pl.BlockSpec((1, tm, Ep), lambda b, m: (b, m, 0)),
        ),
        compiler_params=pltpu.CompilerParams(
            dimension_semantics=("parallel", "parallel")),
        cost_estimate=pl.CostEstimate(
            flops=flops, transcendentals=0, bytes_accessed=bytes_accessed),
    )(patches, w, bias, pos)


def patch_embed_forward(x, params, *, patch_size):
    """x: (B, C, H, W) f32 -> (B, 1 + n_patches + n_registers, E) f32."""
    B, C, H, W = x.shape
    p = patch_size
    Hp, Wp = H // p, W // p
    P = Hp * Wp
    E = params["proj_w"].shape[0]
    K = C * p * p
    Ep = _round_up(E, 128)                       # lane-dense output tiles

    # TODO(synk): patch extraction (im2col) is left to XLA -- expressing the
    # NCHW -> (patch, c*p*p) gather inside the Pallas pipeline needs an
    # in-kernel minor-dim relayout that does not lower robustly; cost is one
    # bf16-sized pass over x. Feature order per patch is (c, dh, dw), matching
    # the Conv2d weight layout.
    xp = x.reshape(B, C, Hp, p, Wp, p).transpose(0, 2, 4, 1, 3, 5)
    patches = xp.reshape(B, P, K).astype(jnp.bfloat16)

    w = params["proj_w"].reshape(E, K).T.astype(jnp.bfloat16)      # (K, E)
    bias = params["proj_b"].reshape(1, E).astype(jnp.float32)

    pos = params["pos_embed"][0].astype(jnp.float32)               # (S, E)
    pos_cls, pos_patch, pos_reg = pos[:1], pos[1:1 + P], pos[1 + P:]

    if Ep != E:   # pad embed dim to a multiple of 128 (zeros; sliced off below)
        padE = ((0, 0), (0, Ep - E))
        w = jnp.pad(w, padE)
        bias = jnp.pad(bias, padE)
        pos_patch_k = jnp.pad(pos_patch, padE)
    else:
        pos_patch_k = pos_patch

    tm = _pick_tm(P)
    proj = fused_patch_proj(patches, w, bias, pos_patch_k, tm=tm)  # (B, P, Ep)
    proj = proj[..., :E]

    # cls / register tokens + their pos rows: tiny (B, 1 + NREG, E) slab.
    head = jnp.broadcast_to(params["cls_token"][0] + pos_cls, (B, 1, E))
    tail = jnp.broadcast_to(params["register_token"] + pos_reg,
                            (B,) + params["register_token"].shape)

    # NOTE: the PyTorch forward computes `X = self.norm(x)` but never uses it
    # (dead code), so RMSNorm does not affect the output and is omitted here.
    # TODO(synk): RMSNorm result is discarded in the reference forward; not applied.
    return jnp.concatenate([head, proj, tail], axis=1)


# --------------------------------- main --------------------------------------

if __name__ == "__main__":
    # small config consistent with the module
    B, C, IMG, P, E, NREG = 2, 4, 16, 4, 32, 6
    NPATCH = (IMG // P) ** 2
    SEQ = NPATCH + 1 + NREG

    key = jax.random.PRNGKey(0)
    k_x, k_w, k_b, k_cls, k_reg, k_pos = jax.random.split(key, 6)

    x = jax.random.normal(k_x, (B, C, IMG, IMG), dtype=jnp.float32)

    # Deterministic parameter init (shapes from PatchEmbed.__init__). Random
    # (not zeros) so the token / pos-embed paths are exercised non-trivially.
    params = {
        "proj_w": 0.05 * jax.random.normal(k_w, (E, C, P, P), dtype=jnp.float32),
        "proj_b": 0.05 * jax.random.normal(k_b, (E,), dtype=jnp.float32),
        "cls_token": 0.05 * jax.random.normal(k_cls, (1, 1, E), dtype=jnp.float32),
        "register_token": 0.05 * jax.random.normal(k_reg, (NREG, E), dtype=jnp.float32),
        "pos_embed": 0.05 * jax.random.normal(k_pos, (1, SEQ, E), dtype=jnp.float32),
    }

    fwd = jax.jit(functools.partial(patch_embed_forward, patch_size=P))
    out = jax.block_until_ready(fwd(x, params))
    assert out.shape == (B, SEQ, E), out.shape

    # pure-JAX f32 reference check (kernel uses bf16 inputs, f32 accumulation)
    xp = x.reshape(B, C, IMG // P, P, IMG // P, P).transpose(0, 2, 4, 1, 3, 5)
    patches_ref = xp.reshape(B, NPATCH, C * P * P)
    proj_ref = jnp.einsum("bpk,ek->bpe", patches_ref,
                          params["proj_w"].reshape(E, -1)) + params["proj_b"]
    cls_ref = jnp.broadcast_to(params["cls_token"], (B, 1, E))
    reg_ref = jnp.broadcast_to(params["register_token"][None], (B, NREG, E))
    ref = jnp.concatenate([cls_ref, proj_ref, reg_ref], axis=1) + params["pos_embed"]

    if not np.allclose(np.asarray(out), np.asarray(ref), rtol=2e-2, atol=2e-2):
        err = float(np.max(np.abs(np.asarray(out) - np.asarray(ref))))
        raise AssertionError(
            f"Pallas PatchEmbed output mismatch vs JAX reference (max abs err {err})")

    print("KERNEL_OK")
</pallas_src>

<mosaic_0001>
module attributes {stable_mosaic.version = 11 : i64} {
  func.func @_proj_fused_kernel(%arg0: i32, %arg1: i32, %arg2: memref<1x16x64xbf16, #tpu.memory_space<vmem>>, %arg3: memref<64x128xbf16, #tpu.memory_space<vmem>>, %arg4: memref<1x128xf32, #tpu.memory_space<vmem>>, %arg5: memref<16x128xf32, #tpu.memory_space<vmem>>, %arg6: memref<1x16x128xf32, #tpu.memory_space<vmem>>) attributes {dimension_semantics = [#tpu.dimension_semantics<parallel>, #tpu.dimension_semantics<parallel>], iteration_bounds = array<i64: 2, 1>, scalar_prefetch = 0 : i64, scratch_operands = 0 : i64, tpu.core_type = #tpu.core_type<tc>, window_params = [{transform_indices = @transform_0, window_bounds = array<i64: 1, 16, 64>}, {pipeline_mode = #tpu.pipeline_mode<synchronous>, transform_indices = @transform_1, window_bounds = array<i64: 64, 128>}, {pipeline_mode = #tpu.pipeline_mode<synchronous>, transform_indices = @transform_2, window_bounds = array<i64: 1, 128>}, {transform_indices = @transform_3, window_bounds = array<i64: 16, 128>}, {transform_indices = @transform_4, window_bounds = array<i64: 1, 16, 128>}]} {
    %c0 = arith.constant 0 : index
    %c0_0 = arith.constant 0 : index
    %c0_1 = arith.constant 0 : index
    %0 = vector.load %arg2[%c0, %c0_0, %c0_1] : memref<1x16x64xbf16, #tpu.memory_space<vmem>>, vector<1x16x64xbf16>
    %1 = vector.shape_cast %0 : vector<1x16x64xbf16> to vector<16x64xbf16>
    %c0_2 = arith.constant 0 : index
    %c0_3 = arith.constant 0 : index
    %2 = vector.load %arg3[%c0_2, %c0_3] : memref<64x128xbf16, #tpu.memory_space<vmem>>, vector<64x128xbf16>
    %cst = arith.constant dense<0.000000e+00> : vector<16x128xf32>
    %3 = tpu.matmul %1, %2, %cst {dimension_numbers = #tpu.dot_dimension_numbers<[1], [0], [0], [1], [0, 0, 1, 1], [], []>} : vector<16x64xbf16>, vector<64x128xbf16>, vector<16x128xf32> -> vector<16x128xf32>
    %c0_4 = arith.constant 0 : index
    %c0_5 = arith.constant 0 : index
    %4 = vector.load %arg4[%c0_4, %c0_5] : memref<1x128xf32, #tpu.memory_space<vmem>>, vector<1x128xf32>
    %5 = vector.broadcast %4 : vector<1x128xf32> to vector<16x128xf32>
    %6 = arith.addf %3, %5 : vector<16x128xf32>
    %c0_6 = arith.constant 0 : index
    %c0_7 = arith.constant 0 : index
    %7 = vector.load %arg5[%c0_6, %c0_7] : memref<16x128xf32, #tpu.memory_space<vmem>>, vector<16x128xf32>
    %8 = arith.addf %6, %7 : vector<16x128xf32>
    %9 = vector.shape_cast %8 : vector<16x128xf32> to vector<1x16x128xf32>
    %c0_8 = arith.constant 0 : index
    %c0_9 = arith.constant 0 : index
    %c0_10 = arith.constant 0 : index
    %10 = vector.load %arg6[%c0_8, %c0_9, %c0_10] : memref<1x16x128xf32, #tpu.memory_space<vmem>>, vector<1x16x128xf32>
    tpu.vector_store %arg6[%c0_8, %c0_9, %c0_10], %9 {strides = array<i32>} : memref<1x16x128xf32, #tpu.memory_space<vmem>>, vector<1x16x128xf32>,
    return
  }
  func.func @transform_0(%arg0: i32, %arg1: i32) -> (i32, i32, i32) {
    %c0_i32 = arith.constant 0 : i32
    %c0_i32_0 = arith.constant 0 : i32
    return %arg0, %arg1, %c0_i32 : i32, i32, i32
  }
  func.func @transform_1(%arg0: i32, %arg1: i32) -> (i32, i32) {
    %c0_i32 = arith.constant 0 : i32
    %c0_i32_0 = arith.constant 0 : i32
    %c0_i32_1 = arith.constant 0 : i32
    return %c0_i32, %c0_i32_0 : i32, i32
  }
  func.func @transform_2(%arg0: i32, %arg1: i32) -> (i32, i32) {
    %c0_i32 = arith.constant 0 : i32
    %c0_i32_0 = arith.constant 0 : i32
    %c0_i32_1 = arith.constant 0 : i32
    return %c0_i32, %c0_i32_0 : i32, i32
  }
  func.func @transform_3(%arg0: i32, %arg1: i32) -> (i32, i32) {
    %c0_i32 = arith.constant 0 : i32
    %c0_i32_0 = arith.constant 0 : i32
    return %arg1, %c0_i32 : i32, i32
  }
  func.func @transform_4(%arg0: i32, %arg1: i32) -> (i32, i32, i32) {
    %c0_i32 = arith.constant 0 : i32
    %c0_i32_0 = arith.constant 0 : i32
    return %arg0, %arg1, %c0_i32 : i32, i32, i32
  }
}

</mosaic_0001>

<bundles_post_ra>
// kernel: patch_embed_forward.1
= control target key start
LH: loop header
LB: loop body
LE: loop exit
PB: predicated region body
PF: predicated region fallthrough
CT: control target
= control target key end

     0   :  { %s543_s15 = smov 0   ;;  %s545_s16 = smov 0   ;;  %s597_s0 = inlined_call_operand.vmem [shape: bf16[2,16,64], index: 0, kind: input, shape index: {}]   ;;  %s598_s1 = inlined_call_operand.vmem [shape: bf16[64,128], index: 1, kind: input, shape index: {}]   ;;  %s599_s2 = inlined_call_operand.vmem [shape: f32[1,128], index: 2, kind: input, shape index: {}]   ;;  %s600_s3 = inlined_call_operand.vmem [shape: f32[16,128], index: 3, kind: input, shape index: {}]   ;;  %s601_s4 = inlined_call_operand.vmem [shape: f32[2,16,128], index: 4, kind: output, shape index: {}]  }
   0x1   :  { %s547_s17 = smov 0  }
   0x2 LB: > { %s26_s18 = sadd.s32 1, %s512_s16  ;;  %p434_p0 = scmp.ge.s32.totalorder %s516_s17, 1  ;;  %s516_s17 = sphi %s547_s17, %s14_s17   ;;  %s512_s16 = sphi %s545_s16, %s603_s16   ;;  %s508_s15 = sphi %s543_s15, %s602_s15  }
   0x3   : > { %p28_p1 = scmp.ge.s32.totalorder %s26_s18, 2  ;;  %p194_p2 = scmp.lt.s32.totalorder %s516_s17, 3 }
   0x5   : > { %s605_s18 = smov (%p28_p1, %s26_s18), 0  ;;  %p195_p3 = pnand %p434_p0, %p194_p2 }
   0x6   : > { %p234_p4 = scmp.lt.s32.totalorder (!%p195_p3), %s508_s15, 1 }
   0x7   : > { %198 = sbr.rel (%p195_p3) target bundleno = 167 (0xa7), region = 36 }
   0xc   : > { %v468_v0 = vld [vmem:[%s598_s1 + $0x18] sm:$0xff]  ;;  %v467_v1 = vld [vmem:[%s598_s1 + $0x10] sm:$0xff]  ;;  %s607_s15 = smov (!%p234_p4, %s508_s15), 1  ;;  %v466_v2 = vld [vmem:[%s598_s1 + $0x8] sm:$0xff]  ;;  %vm303_vm0 = vcmask 523264  }
   0xd   : > { %311 = vmatpush.bf16.msra.mxu0 %v468_v0  ;;  %s462_s25 = sshll.u32 %s607_s15, 3  ;;  %v465_v3 = vld [vmem:[%s598_s1] sm:$0xff]  ;;  %s463_s7 = sshll.u32 %s607_s15, 4  ;;  %v322_v11 = vld [vmem:[%s600_s3 + $0x8] sm:$0xff] }
   0xe   : > { %s241_s30 = scalar_lea.vmem %s597_s0, %s462_s25  ;;  %v493_v5 = vld [vmem:[%s599_s2] ss:$0 sm:$0xff]  ;;  %s257_s12 = scalar_lea.vmem %s601_s4, %s463_s7 }
   0xf   : > { %v464_v4 = vld [vmem:[%s241_s30] sm:$0xff] }
  0x10   : > { %v321_v7 = vld [vmem:[%s600_s3] sm:$0xff] }
  0x11   : > { %312 = vmatpush.bf16.msra.mxu0 %v467_v1 }
  0x15   : > { %313 = vmatpush.bf16.msra.mxu0 %v466_v2 }
  0x19   : > { %314 = vmatpush.bf16.msra.mxu0 %v465_v3 }
  0x1c   : > { %459 = vmatmul.msk.bf16.vlgmr.msra.gmra.mxu0 %vm303_vm0, %v464_v4 }
  0x99   : > { %v316_v6 = vpop.f32.mrf.mxu0 }
  0x9a   : > { %v317_v8 = vadd.f32 %v493_v5, %v316_v6 }
  0x9c   : > { %v323_v9 = vadd.f32 %v321_v7, %v317_v8 }
  0x9e   : > { %325 = vst [vmem:[%s257_s12] sm:$0xff] %v323_v9 }
  0xa1   : > { %v318_v10 = vpop.f32.mrf.mxu0 }
  0xa2   : > { %v319_v12 = vadd.f32 %v493_v5, %v318_v10 }
  0xa4   : > { %v324_v13 = vadd.f32 %v322_v11, %v319_v12 }
  0xa6   : > { %326 = vst [vmem:[%s257_s12 + $0x8] sm:$0xff] %v324_v13 }
  0xa7 PF: > { %s14_s17 = sadd.s32 1, %s516_s17   ;;  %s602_s15 = smov %s512_s16 }
  0xa8   : > { %p11_p5 = scmp.ge.s32.totalorder %s14_s17, 4   ;;  %s603_s16 = smov %s605_s18 }
  0xaa   :  { %13 = sbr.rel (!%p11_p5) target bundleno = 2 (0x2), region = 69 }

</bundles_post_ra>
